<compile_context>
chip_gen: v5e
topology: v5e:2x2
jax: 0.10.0
libtpu: 0.0.40
codegen_flags: <defaults>
</compile_context>

<pallas_src>
import jax
import jax.numpy as jnp
import numpy as np
from jax.experimental import pallas as pl
from jax.experimental.pallas import tpu as pltpu


def _round_up(a, b):
    return (a + b - 1) // b * b


# TODO(synk): patch extraction (im2col) is still built by XLA host-side; a
# further step would be to DMA the padded NCHW input with memory_space=pl.ANY
# and build the 9 shifted windows inside the kernel.
def _im2col_T(x, k=3, stride=2, pad=1):
    """x: (N, C, H, W) -> patches (N, C*k*k, OH*OW); row order (c, kh, kw),
    column order (oh, ow) — i.e. already transposed so M is the lane axis."""
    N, C, H, W = x.shape
    xp = jnp.pad(x, ((0, 0), (0, 0), (pad, pad), (pad, pad)))
    OH = (H + 2 * pad - k) // stride + 1
    OW = (W + 2 * pad - k) // stride + 1
    cols = []
    for dh in range(k):
        for dw in range(k):
            cols.append(
                xp[:, :, dh: dh + stride * OH: stride, dw: dw + stride * OW: stride]
            )
    p = jnp.stack(cols, axis=2)                 # (N, C, k*k, OH, OW)
    p = p.reshape(N, C * k * k, OH * OW)        # pure reshape, no transpose
    return p, OH, OW


def fused_disc_kernel(p_ref, w_ref, fcw_ref, b_ref, o_ref, acc_ref):
    """One (sample n, spatial tile m) grid step.

    p_ref:   (1, Kp, TM)  bf16   im2col patches (conv RHS), lane = spatial
    w_ref:   (Cout, Kp)   bf16   conv weight (conv LHS)
    fcw_ref: (Cout, TM)   bf16   fc weight tile, same layout as conv output
    b_ref:   (1, 1)       f32    fc bias (SMEM)
    o_ref:   (1, 1, 128)  f32    per-sample sigmoid output (broadcast on lanes)
    acc_ref: (Cout, TM)   f32    VMEM accumulator of act * fc_w partial products
    """
    m = pl.program_id(1)

    @pl.when(m == 0)
    def _():
        acc_ref[...] = jnp.zeros_like(acc_ref)

    # Conv tile on the MXU: (Cout, Kp) @ (Kp, TM) -> (Cout, TM), f32 accum.
    conv = jnp.dot(w_ref[...], p_ref[0], preferred_element_type=jnp.float32)
    act = jnp.where(conv >= 0.0, conv, 0.2 * conv)          # LeakyReLU(0.2), f32
    # Fused FC contribution for this tile (VPU multiply-accumulate in f32).
    acc_ref[...] += act * fcw_ref[...].astype(jnp.float32)

    @pl.when(m == pl.num_programs(1) - 1)
    def _():
        z = jnp.sum(acc_ref[...]) + b_ref[0, 0]
        s = 1.0 / (1.0 + jnp.exp(-z))
        o_ref[...] = jnp.broadcast_to(s, o_ref.shape).astype(o_ref.dtype)


def srgan_discriminator_forward(x, conv_w, fc_w, fc_b):
    """x: (N, 3, H, W) f32; conv_w: (Cout, 3, 3, 3); fc_w: (1, Cout*OH*OW); fc_b: (1,)."""
    N, Cin, H, W = x.shape
    Cout = conv_w.shape[0]
    k, stride, pad = 3, 2, 1

    patches, OH, OW = _im2col_T(x, k, stride, pad)          # (N, K, M) f32
    K = Cin * k * k
    M = OH * OW

    Kp = _round_up(K, 32)                                   # sublane-aligned contraction
    TM = 512 if M >= 512 else _round_up(M, 128)             # lane-dense spatial tile
    Mp = _round_up(M, TM)

    # Pad (zeros contribute nothing) and cast GEMM operands to bf16.
    patches = jnp.pad(patches, ((0, 0), (0, Kp - K), (0, Mp - M))).astype(jnp.bfloat16)
    w_mat = jnp.pad(conv_w.reshape(Cout, K), ((0, 0), (0, Kp - K))).astype(jnp.bfloat16)
    # fc weight reshaped to (Cout, M): matches the conv-output tile layout exactly
    # (PyTorch flatten order is C-major then OH, OW), padded with zeros along M.
    fcw = jnp.pad(fc_w.reshape(Cout, M), ((0, 0), (0, Mp - M))).astype(jnp.bfloat16)
    bias = fc_b.reshape(1, 1).astype(jnp.float32)

    grid = (N, Mp // TM)

    flops = 2 * N * Mp * Kp * Cout + 4 * N * Mp * Cout
    bytes_accessed = (patches.size + w_mat.size + fcw.size) * 2 + N * 128 * 4

    out = pl.pallas_call(
        fused_disc_kernel,
        out_shape=jax.ShapeDtypeStruct((N, 1, 128), jnp.float32),
        grid=grid,
        in_specs=[
            pl.BlockSpec((1, Kp, TM), lambda n, m: (n, 0, m)),     # patches
            pl.BlockSpec((Cout, Kp), lambda n, m: (0, 0)),         # conv weight
            pl.BlockSpec((Cout, TM), lambda n, m: (0, m)),         # fc weight tile
            pl.BlockSpec((1, 1), lambda n, m: (0, 0),
                         memory_space=pltpu.MemorySpace.SMEM),     # fc bias
        ],
        out_specs=pl.BlockSpec((1, 1, 128), lambda n, m: (n, 0, 0)),
        scratch_shapes=[pltpu.VMEM((Cout, TM), jnp.float32)],
        compiler_params=pltpu.CompilerParams(
            dimension_semantics=("parallel", "arbitrary")),
        cost_estimate=pl.CostEstimate(
            flops=flops, transcendentals=N, bytes_accessed=bytes_accessed),
    )(patches, w_mat, fcw, bias)

    return out[:, 0, :1]                                    # (N, 1)


def _reference_forward(x, conv_w, fc_w, fc_b):
    """Pure-JAX f32 reference matching the PyTorch module."""
    y = jax.lax.conv_general_dilated(
        x, conv_w, window_strides=(2, 2), padding=((1, 1), (1, 1)),
        dimension_numbers=("NCHW", "OIHW", "NCHW"))
    y = jnp.where(y >= 0.0, y, 0.2 * y)
    y = y.reshape(y.shape[0], -1)
    z = y @ fc_w.T + fc_b
    return 1.0 / (1.0 + jnp.exp(-z))


if __name__ == "__main__":
    key = jax.random.PRNGKey(0)
    k1, k2, k3, k4 = jax.random.split(key, 4)

    N, Cin, H, W = 2, 3, 16, 16
    n_channels = 64
    OH, OW = H // 2, W // 2
    F_ = n_channels * OH * OW

    x = jax.random.normal(k1, (N, Cin, H, W), dtype=jnp.float32)
    conv_w = jax.random.normal(k2, (n_channels, Cin, 3, 3), dtype=jnp.float32) * 0.1
    fc_w = jax.random.normal(k3, (1, F_), dtype=jnp.float32) * 0.02
    fc_b = jax.random.normal(k4, (1,), dtype=jnp.float32) * 0.02

    out = srgan_discriminator_forward(x, conv_w, fc_w, fc_b)
    out = jax.block_until_ready(out)

    ref = _reference_forward(x, conv_w, fc_w, fc_b)
    # bf16 GEMM operands (f32 accumulation) vs f32 reference -> loosened tolerance.
    np.testing.assert_allclose(np.asarray(out), np.asarray(ref), rtol=2e-2, atol=2e-2)

    print("KERNEL_OK")
</pallas_src>

<mosaic_0001>
module attributes {stable_mosaic.version = 11 : i64} {
  func.func @fused_disc_kernel(%arg0: i32, %arg1: i32, %arg2: memref<1x32x128xbf16, #tpu.memory_space<vmem>>, %arg3: memref<64x32xbf16, #tpu.memory_space<vmem>>, %arg4: memref<64x128xbf16, #tpu.memory_space<vmem>>, %arg5: memref<1x1xf32, #tpu.memory_space<smem>>, %arg6: memref<1x1x128xf32, #tpu.memory_space<vmem>>, %arg7: memref<64x128xf32, #tpu.memory_space<vmem>>) attributes {dimension_semantics = [#tpu.dimension_semantics<parallel>, #tpu.dimension_semantics<arbitrary>], iteration_bounds = array<i64: 2, 1>, scalar_prefetch = 0 : i64, scratch_operands = 1 : i64, tpu.core_type = #tpu.core_type<tc>, window_params = [{transform_indices = @transform_0, window_bounds = array<i64: 1, 32, 128>}, {pipeline_mode = #tpu.pipeline_mode<synchronous>, transform_indices = @transform_1, window_bounds = array<i64: 64, 32>}, {transform_indices = @transform_2, window_bounds = array<i64: 64, 128>}, {transform_indices = @transform_3, window_bounds = array<i64: 1, 1>}, {transform_indices = @transform_4, window_bounds = array<i64: 1, 1, 128>}]} {
    %c0_i32 = arith.constant 0 : i32
    %0 = arith.cmpi eq, %arg1, %c0_i32 : i32
    %1 = arith.extui %0 : i1 to i32
    %c0_i32_0 = arith.constant 0 : i32
    %2 = arith.cmpi ne, %1, %c0_i32_0 : i32
    scf.if %2 {
      %cst_15 = arith.constant 0.000000e+00 : f32
      %21 = vector.broadcast %cst_15 : f32 to vector<64x128xf32>
      %c0_16 = arith.constant 0 : index
      %c0_17 = arith.constant 0 : index
      %22 = vector.load %arg7[%c0_16, %c0_17] : memref<64x128xf32, #tpu.memory_space<vmem>>, vector<64x128xf32>
      tpu.vector_store %arg7[%c0_16, %c0_17], %21 {strides = array<i32>} : memref<64x128xf32, #tpu.memory_space<vmem>>, vector<64x128xf32>,
    } else {
    }
    %c0 = arith.constant 0 : index
    %c0_1 = arith.constant 0 : index
    %3 = vector.load %arg3[%c0, %c0_1] : memref<64x32xbf16, #tpu.memory_space<vmem>>, vector<64x32xbf16>
    %c0_2 = arith.constant 0 : index
    %c0_3 = arith.constant 0 : index
    %c0_4 = arith.constant 0 : index
    %4 = vector.load %arg2[%c0_2, %c0_3, %c0_4] : memref<1x32x128xbf16, #tpu.memory_space<vmem>>, vector<1x32x128xbf16>
    %5 = vector.shape_cast %4 : vector<1x32x128xbf16> to vector<32x128xbf16>
    %cst = arith.constant dense<0.000000e+00> : vector<64x128xf32>
    %6 = tpu.matmul %3, %5, %cst {dimension_numbers = #tpu.dot_dimension_numbers<[1], [0], [0], [1], [0, 0, 1, 1], [], []>} : vector<64x32xbf16>, vector<32x128xbf16>, vector<64x128xf32> -> vector<64x128xf32>
    %cst_5 = arith.constant 0.000000e+00 : f32
    %7 = vector.broadcast %cst_5 : f32 to vector<64x128xf32>
    %8 = arith.cmpf oge, %6, %7 : vector<64x128xf32>
    %cst_6 = arith.constant 2.000000e-01 : f32
    %9 = vector.broadcast %cst_6 : f32 to vector<64x128xf32>
    %10 = arith.mulf %9, %6 : vector<64x128xf32>
    %11 = arith.select %8, %6, %10 : vector<64x128xi1>, vector<64x128xf32>
    %c0_7 = arith.constant 0 : index
    %c0_8 = arith.constant 0 : index
    %12 = vector.load %arg7[%c0_7, %c0_8] : memref<64x128xf32, #tpu.memory_space<vmem>>, vector<64x128xf32>
    %c0_9 = arith.constant 0 : index
    %c0_10 = arith.constant 0 : index
    %13 = vector.load %arg4[%c0_9, %c0_10] : memref<64x128xbf16, #tpu.memory_space<vmem>>, vector<64x128xbf16>
    %14 = arith.extf %13 : vector<64x128xbf16> to vector<64x128xf32>
    %15 = arith.mulf %11, %14 : vector<64x128xf32>
    %16 = arith.addf %12, %15 : vector<64x128xf32>
    %c0_11 = arith.constant 0 : index
    %c0_12 = arith.constant 0 : index
    %17 = vector.load %arg7[%c0_11, %c0_12] : memref<64x128xf32, #tpu.memory_space<vmem>>, vector<64x128xf32>
    tpu.vector_store %arg7[%c0_11, %c0_12], %16 {strides = array<i32>} : memref<64x128xf32, #tpu.memory_space<vmem>>, vector<64x128xf32>,
    %c0_i32_13 = arith.constant 0 : i32
    %18 = arith.cmpi eq, %arg1, %c0_i32_13 : i32
    %19 = arith.extui %18 : i1 to i32
    %c0_i32_14 = arith.constant 0 : i32
    %20 = arith.cmpi ne, %19, %c0_i32_14 : i32
    scf.if %20 {
      %c0_15 = arith.constant 0 : index
      %c0_16 = arith.constant 0 : index
      %21 = vector.load %arg7[%c0_15, %c0_16] : memref<64x128xf32, #tpu.memory_space<vmem>>, vector<64x128xf32>
      %22 = vector.shape_cast %21 : vector<64x128xf32> to vector<1x64x128xf32>
      %cst_17 = arith.constant dense<0.000000e+00> : vector<1xf32>
      %23 = vector.multi_reduction <add>, %22, %cst_17 [1, 2] : vector<1x64x128xf32> to vector<1xf32>
      %24 = vector.shape_cast %23 : vector<1xf32> to vector<1x1x1xf32>
      %25 = vector.extract %24[0, 0, 0] : f32 from vector<1x1x1xf32>
      %c0_18 = arith.constant 0 : index
      %c0_19 = arith.constant 0 : index
      %26 = memref.load %arg5[%c0_18, %c0_19] : memref<1x1xf32, #tpu.memory_space<smem>>
      %27 = arith.addf %25, %26 : f32
      %cst_20 = arith.constant 0.000000e+00 : f32
      %28 = arith.subf %cst_20, %27 : f32
      %29 = math.exp %28 : f32
      %cst_21 = arith.constant 1.000000e+00 : f32
      %30 = arith.addf %cst_21, %29 : f32
      %cst_22 = arith.constant 1.000000e+00 : f32
      %31 = arith.divf %cst_22, %30 : f32
      %32 = vector.broadcast %31 : f32 to vector<1x1x128xf32>
      %c0_23 = arith.constant 0 : index
      %c0_24 = arith.constant 0 : index
      %c0_25 = arith.constant 0 : index
      %33 = vector.load %arg6[%c0_23, %c0_24, %c0_25] : memref<1x1x128xf32, #tpu.memory_space<vmem>>, vector<1x1x128xf32>
      tpu.vector_store %arg6[%c0_23, %c0_24, %c0_25], %32 {strides = array<i32>} : memref<1x1x128xf32, #tpu.memory_space<vmem>>, vector<1x1x128xf32>,
    } else {
    }
    return
  }
  func.func @transform_0(%arg0: i32, %arg1: i32) -> (i32, i32, i32) {
    %c0_i32 = arith.constant 0 : i32
    %c0_i32_0 = arith.constant 0 : i32
    return %arg0, %c0_i32, %arg1 : i32, i32, i32
  }
  func.func @transform_1(%arg0: i32, %arg1: i32) -> (i32, i32) {
    %c0_i32 = arith.constant 0 : i32
    %c0_i32_0 = arith.constant 0 : i32
    %c0_i32_1 = arith.constant 0 : i32
    return %c0_i32, %c0_i32_0 : i32, i32
  }
  func.func @transform_2(%arg0: i32, %arg1: i32) -> (i32, i32) {
    %c0_i32 = arith.constant 0 : i32
    %c0_i32_0 = arith.constant 0 : i32
    return %c0_i32, %arg1 : i32, i32
  }
  func.func @transform_3(%arg0: i32, %arg1: i32) -> (i32, i32) {
    %c0_i32 = arith.constant 0 : i32
    %c0_i32_0 = arith.constant 0 : i32
    %c0_i32_1 = arith.constant 0 : i32
    return %c0_i32, %c0_i32_0 : i32, i32
  }
  func.func @transform_4(%arg0: i32, %arg1: i32) -> (i32, i32, i32) {
    %c0_i32 = arith.constant 0 : i32
    %c0_i32_0 = arith.constant 0 : i32
    %c0_i32_1 = arith.constant 0 : i32
    return %arg0, %c0_i32, %c0_i32_0 : i32, i32, i32
  }
}

</mosaic_0001>

<bundles_post_ra>
// kernel: tpu_custom_call.1
= control target key start
LH: loop header
LB: loop body
LE: loop exit
PB: predicated region body
PF: predicated region fallthrough
CT: control target
= control target key end

     0   :  { %s969_s0 = inlined_call_operand.vmem [shape: bf16[2,32,128], index: 0, kind: input, shape index: {}]   ;;  %s970_s1 = inlined_call_operand.vmem [shape: bf16[64,32], index: 1, kind: input, shape index: {}]   ;;  %s971_s2 = inlined_call_operand.hbm [shape: bf16[64,128], index: 2, kind: input, shape index: {}]   ;;  %s972_s3 = inlined_call_operand.<no memory space> [shape: f32[1,1], index: 3, kind: input, shape index: {}]   ;;  %s973_s4 = inlined_call_operand.hbm [shape: f32[2,1,128], index: 4, kind: output, shape index: {}]  }
   0x1   :  { %9 = sst [smem:[#allocation3]] %s972_s3 }
   0x2   :  { %10 = vsyncpa [#allocation5], 0 }
   0x3   :  { %11 = vsyncpa [#allocation6], 0 }
   0x4   :  { %13 = vsyncpa [#allocation6 + $0x1], 0  ;;  %s857_s17 = smov 0   ;;  %s859_s18 = smov 0  }
   0x5   :  { %s861_s19 = smov 0   ;;  %s863_s20 = smov 0  }
   0x6   :  { %s865_s21 = smov 0   ;;  %s867_s22 = smov 0  }
   0x7 LB: > { %s563_s3 = sadd.s32 4294967295, %s824_s22   ;;  %s564_s23 = sadd.s32 4294967294, %s824_s22   ;;  %s824_s22 = sphi %s867_s22, %s19_s22   ;;  %s820_s21 = sphi %s865_s21, %s980_s21   ;;  %s816_s20 = sphi %s863_s20, %s979_s20   ;;  %s812_s19 = sphi %s861_s19, %s978_s19   ;;  %s808_s18 = sphi %s859_s18, %s977_s18   ;;  %s804_s17 = sphi %s857_s17, %s976_s17  }
   0x8   : > { %s31_s24 = sadd.s32 1, %s820_s21  ;;  %s134_s25 = sadd.s32 1, %s812_s19 }
   0x9   : > { %p33_p0 = scmp.ge.s32.totalorder %s31_s24, 2  ;;  %p144_p1 = scmp.ne.s32.totalorder %s812_s19, %s808_s18 }
   0xa   : > { %p145_p2 = scmp.eq.s32.totalorder %s563_s3, 1  ;;  %p150_p3 = scmp.ne.s32.totalorder %s808_s18, %s804_s17 }
   0xb   : > { %s982_s24 = smov (%p33_p0, %s31_s24), 0  ;;  %p151_p5 = scmp.eq.s32.totalorder %s564_s23, 1 }
   0xc   : > { %p897_p4 = por %p145_p2, %p144_p1  ;;  %s131_s27 = ssub.s32 %s820_s21, %s982_s24 }
   0xd   : > { %p565_p6 = scmp.ge.s32.totalorder %s824_s22, 1  ;;  %p132_p7 = scmp.eq.s32.totalorder %s131_s27, 0 }
   0xe   : > { %p904_p8 = por %p151_p5, %p150_p3  ;;  %p158_p9 = scmp.lt.s32.totalorder %s824_s22, 3 }
   0xf   : > { %s910_s29 = scalar_select %p132_p7, %s812_s19, %s134_s25  }
  0x10   : > { %p159_p10 = pnand %p565_p6, %p158_p9  ;;  %p654_p11 = scmp.eq.s32.totalorder %s563_s3, 0 }
  0x11   : > { %s174_s6 = sshll.u32 %s971_s2, 4  ;;  %s826_s7 = smov [#allocation4]   ;;  %s175_s6 = int_to_ptr.hbm [resolvable:$true] %s174_s6 }
  0x12   : > { %p646_p12 = pneg %p159_p10  ;;  %s176_s8 = sshll.u32 %s826_s7, 4  ;;  %s177_s8 = int_to_ptr.vmem [resolvable:$true] %s176_s8 }
  0x13   : > { %s827_s9 = smov 64   ;;  %s828_s10 = smov 4  }
  0x14   : > { %p647_p13 = pnand %p654_p11, %p646_p12  ;;  %206 = sbr.rel (%p159_p10) target bundleno = 509 (0x1fd), region = 36 }
  0x16   : > { %649 = dma.hbm_to_vmem [thread:$0]  (!%p647_p13), %s175_s6, 512, %s177_s8, [#allocation5], %s827_s9, %s827_s9, %s828_s10  }
  0x19   : > { %795 = dma.done.wait (%p654_p11), [#allocation5], 512  }
  0x1a   : > { %797 = vsyncadd (%p654_p11), [#allocation5], 4294966784  ;;  %p235_p0 = scmp.lt.s32.totalorder %s816_s20, 1  ;;  %v603_v2 = vld [vmem:[%s970_s1] sm:$0xff]  ;;  %v604_v3 = vld [vmem:[%s970_s1 + $0x8] sm:$0xff]  ;;  %vm300_vm0 = vcmask 261120   ;;  %s476_s16 = scalar_lea.hbm %s973_s4, %s816_s20 }
  0x1b   : > { %v605_v4 = vld [vmem:[%s970_s1 + $0x10] sm:$0xff]  ;;  %v606_v5 = vld [vmem:[%s970_s1 + $0x18] sm:$0xff]  ;;  %v610_v9 = vld [vmem:[#allocation4] sm:$0xff]   ;;  %s441_s7 = sld [smem:[#allocation3]]  ;;  %s233_s13 = sand.u32 1, %s808_s18  }
  0x1c   : > { %s236_s11 = scalar_select %p235_p0, %s816_s20, 1  ;;  %v625_v11 = vld [vmem:[#allocation4 + $0x8] sm:$0xff]   ;;  %v611_v14 = vunpack.c.l.bf16 %v610_v9  ;;  %v612_v16 = vunpack.c.h.bf16 %v610_v9  ;;  %v626_v24 = vld [vmem:[#allocation4 + $0x10] sm:$0xff]   ;;  %v627_v33 = vld [vmem:[#allocation4 + $0x18] sm:$0xff]  }
  0x1d   : > { %v615_v21 = vunpack.c.l.bf16 %v625_v11  ;;  %v616_v28 = vunpack.c.h.bf16 %v625_v11  ;;  %v619_v31 = vunpack.c.l.bf16 %v626_v24  ;;  %v620_v37 = vunpack.c.h.bf16 %v626_v24  ;;  %s234_s3 = scalar_lea.vmem [#allocation7], %s233_s13  ;;  %s480_s25 = sshll.u32 %s476_s16, 4  ;;  %s481_s25 = int_to_ptr.hbm [resolvable:$true] %s480_s25 }
  0x1e   : > { %s602_s12 = sshll.u32 %s236_s11, 4  ;;  %v623_v43 = vunpack.c.l.bf16 %v627_v33  ;;  %v624_v49 = vunpack.c.h.bf16 %v627_v33  ;;  %s478_s23 = sshll.u32 %s234_s3, 4  ;;  %s479_s23 = int_to_ptr.vmem [resolvable:$true] %s478_s23 }
  0x1f   : > { %s242_s15 = scalar_lea.vmem %s969_s0, %s602_s12  ;;  %s468_s30 = scalar_lea.sflag [#allocation6], %s233_s13 }
  0x20   : > { %v608_v0 = vld [vmem:[%s242_s15 + $0x8] sm:$0xff]  ;;  %v607_v1 = vld [vmem:[%s242_s15] sm:$0xff]  ;;  %s756_s5 = sshra.s32 %s481_s25, 4  ;;  %s762_s20 = scalar_lea.hbm %s973_s4, 2  ;;  %s757_s5 = int_to_ptr.hbm [resolvable:$true] %s756_s5 }
  0x21   : > { %319 = vmatpush.bf16.msra.mxu0 %v608_v0  ;;  %628 = vmatpush.bf16.msra.mxu1 %v608_v0  ;;  %s758_s6 = scalar_lea.hbm %s757_s5, 1  ;;  %p763_p5 = scmp.lt.s32.totalorder %s757_s5, %s973_s4 }
  0x22   : > { %629 = vmatpush.bf16.msra.mxu2 %v608_v0  ;;  %630 = vmatpush.bf16.msra.mxu3 %v608_v0  ;;  %p759_p1 = scmp.ne.s32.totalorder %s757_s5, %s758_s6  ;;  %p764_p6 = scmp.lt.s32.totalorder %s762_s20, %s758_s6 }
  0x24   : > { %p760_p2 = pnand %p759_p1, %p897_p4  ;;  %p765_p7 = por %p764_p6, %p763_p5 }
  0x25   : > { %320 = vmatpush.bf16.msra.mxu0 %v607_v1  ;;  %631 = vmatpush.bf16.msra.mxu1 %v607_v1 }
  0x26   : > { %632 = vmatpush.bf16.msra.mxu2 %v607_v1  ;;  %633 = vmatpush.bf16.msra.mxu3 %v607_v1  ;;  %p761_p3 = pneg %p760_p2 }
  0x28   : > { %596 = vmatmul.msk.bf16.vlgmr.msra.gmra.mxu0 %vm300_vm0, %v603_v2  ;;  %597 = vmatmul.msk.bf16.vlgmr.msra.gmra.mxu1 %vm300_vm0, %v604_v3  ;;  %p766_p9 = pnand %p765_p7, %p761_p3 }
  0x29   : > { %598 = vmatmul.msk.bf16.vlgmr.msra.gmra.mxu2 %vm300_vm0, %v605_v4  ;;  %599 = vmatmul.msk.bf16.vlgmr.msra.gmra.mxu3 %vm300_vm0, %v606_v5 }
  0xa5   : > { %v322_v6 = vpop.f32.mrf.mxu0  ;;  %v327_v7 = vpop.f32.mrf.mxu1 }
  0xa6   : > { %v350_v8 = vmul.f32 0.2, %v322_v6  ;;  %vm342_vm1 = vcmp.ge.f32.partialorder %v322_v6, 0.0  ;;  %v352_v10 = vmul.f32 0.2, %v327_v7  ;;  %vm344_vm2 = vcmp.ge.f32.partialorder %v327_v7, 0.0 }
  0xa8   : > { %v358_v18 = vsel %vm342_vm1, %v322_v6, %v350_v8  ;;  %v360_v22 = vsel %vm344_vm2, %v327_v7, %v352_v10 }
  0xa9   : > { %v390_v26 = vmul.f32 %v611_v14, %v358_v18  ;;  %v392_v30 = vmul.f32 %v615_v21, %v360_v22 }
  0xac   : > { %v332_v12 = vpop.f32.mrf.mxu2  ;;  %v337_v13 = vpop.f32.mrf.mxu3 }
  0xad   : > { %v324_v15 = vpop.f32.mrf.mxu0  ;;  %v329_v17 = vpop.f32.mrf.mxu1  ;;  %v354_v23 = vmul.f32 0.2, %v332_v12  ;;  %vm346_vm5 = vcmp.ge.f32.partialorder %v332_v12, 0.0  ;;  %vm348_vm6 = vcmp.ge.f32.partialorder %v337_v13, 0.0  ;;  %v356_v35 = vmul.f32 0.2, %v337_v13 }
  0xae   : > { %vm343_vm3 = vcmp.ge.f32.partialorder %v324_v15, 0.0  ;;  %v351_v19 = vmul.f32 0.2, %v324_v15  ;;  %v353_v20 = vmul.f32 0.2, %v329_v17  ;;  %vm345_vm4 = vcmp.ge.f32.partialorder %v329_v17, 0.0 }
  0xaf   : > { %v362_v34 = vsel %vm346_vm5, %v332_v12, %v354_v23  ;;  %v364_v47 = vsel %vm348_vm6, %v337_v13, %v356_v35 }
  0xb0   : > { %v359_v25 = vsel %vm343_vm3, %v324_v15, %v351_v19  ;;  %v361_v29 = vsel %vm345_vm4, %v329_v17, %v353_v20  ;;  %v394_v44 = vmul.f32 %v619_v31, %v362_v34  ;;  %v396_v52 = vmul.f32 %v623_v43, %v364_v47 }
  0xb1   : > { %v391_v27 = vmul.f32 %v612_v16, %v359_v25  ;;  %v393_v39 = vmul.f32 %v616_v28, %v361_v29 }
  0xb3   : > { %v425_v32 = vadd.f32 %v391_v27, %v390_v26 }
  0xb4   : > { %v334_v36 = vpop.f32.mrf.mxu2  ;;  %v339_v38 = vpop.f32.mrf.mxu3 }
  0xb5   : > { %v426_v40 = vadd.f32 %v425_v32, %v392_v30  ;;  %vm347_vm7 = vcmp.ge.f32.partialorder %v334_v36, 0.0  ;;  %v355_v41 = vmul.f32 0.2, %v334_v36  ;;  %v357_v42 = vmul.f32 0.2, %v339_v38 }
  0xb6   : > { %vm349_vm8 = vcmp.ge.f32.partialorder %v339_v38, 0.0 }
  0xb7   : > { %v427_v45 = vadd.f32 %v426_v40, %v393_v39  ;;  %v363_v46 = vsel %vm347_vm7, %v334_v36, %v355_v41  ;;  %v365_v51 = vsel %vm349_vm8, %v339_v38, %v357_v42 }
  0xb8   : > { %v395_v48 = vmul.f32 %v620_v37, %v363_v46  ;;  %v397_v54 = vmul.f32 %v624_v49, %v365_v51 }
  0xb9   : > { %v428_v50 = vadd.f32 %v427_v45, %v394_v44 }
  0xbb   : > { %v429_v53 = vadd.f32 %v428_v50, %v395_v48 }
  0xbd   : > { %v430_v55 = vadd.f32 %v429_v53, %v396_v52 }
  0xbf   : > { %v431_v56 = vadd.f32 %v430_v55, %v397_v54 }
  0xc1   : > { %432 = vadd.xlane.f32.xlu0 %v431_v56 }
 0x134   : > { %v433_v57 = vpop.xlane.xlu0 %432 }
 0x135   : > { %v434_v58 = vrot.slane %v433_v57, 4 }
 0x137   : > { %v435_v59 = vadd.f32 %v434_v58, %v433_v57 }
 0x139   : > { %v436_v60 = vrot.slane %v435_v59, 2 }
 0x13b   : > { %v437_v61 = vadd.f32 %v436_v60, %v435_v59 }
 0x13d   : > { %v438_v62 = vrot.slane %v437_v61, 1 }
 0x13f   : > { %v439_v63 = vadd.f32 %v438_v62, %v437_v61 }
 0x141   : > { %634 = vpush %v439_v63 }
 0x172   : > { %s635_s8 = spop %634 }
 0x173   : > { %s442_s9 = sadd.f32 %s635_s8, %s441_s7 }
 0x175   : > { %s443_s10 = ssub.f32 0.0, %s442_s9 }
 0x177   : > { %v444_v0 = vstv %s443_s10 }
 0x178   : > { %v445_v1 = vmul.f32 1.442695, %v444_v0 }
 0x17a   : > { %708 = vpow2.f32 %v445_v1 }
 0x180   : > { %v709_v2 = vpop.eup %708 }
 0x181   : > { %636 = vpush %v709_v2 }
 0x1b2   : > { %s637_s11 = spop %636 }
 0x1b3   : > { %s448_s12 = sadd.f32 1.0, %s637_s11 }
 0x1b5   : > { %v449_v3 = vstv %s448_s12 }
 0x1b6   : > { %710 = vrcp.f32 %v449_v3  ;;  %v461_v7 = vand.u32 2147483648, %v449_v3  ;;  %v459_v9 = vand.u32 2147483647, %v449_v3  ;;  %vm455_vm10 = vweird.f32 %v449_v3 }
 0x1b8   : > { %v462_v11 = vor.u32 1.1754944e-38, %v461_v7  ;;  %vm460_vm12 = vcmp.eq.f32.partialorder %v459_v9, 8.507059e+37 }
 0x1bc   : > { %v711_v4 = vpop.eup %710 }
 0x1bd   : > { %v451_v5 = vmul.f32 %v711_v4, %v449_v3  ;;  %vm456_vm9 = vweird.f32 %v711_v4 }
 0x1be   : > { %vm457_vm11 = vmor %vm455_vm10, %vm456_vm9 }
 0x1bf   : > { %v452_v6 = vsub.f32 1.0, %v451_v5 }
 0x1c1   : > { %v453_v8 = vmul.f32 %v711_v4, %v452_v6 }
 0x1c3   : > { %v454_v10 = vadd.f32 %v711_v4, %v453_v8 }
 0x1c5   : > { %v458_v12 = vsel %vm457_vm11, %v711_v4, %v454_v10 }
 0x1c6   : > { %v463_v13 = vsel %vm460_vm12, %v462_v11, %v458_v12 }
 0x1c7   : > { %638 = vpush %v463_v13 }
 0x1f8   : > { %s639_s27 = spop %638 }
 0x1f9   : > { %v465_v14 = vstv %s639_s27 }
 0x1fa   : > { %466 = vst [vmem:[%s234_s3] sm:$0x1] %v465_v14 }
 0x1fb   : > { %769 = shalt.err (!%p766_p9)
}
 0x1fc   : > { %644 = dma.vmem_to_hbm [thread:$0]  (%p897_p4), %s479_s23, 16, %s481_s25, %s468_s30  }
 0x1fd PF: > { %p656_p10 = scmp.ge.s32.totalorder %s824_s22, 2  ;;  %s492_s11 = sand.u32 1, %s804_s17  }
 0x1fe   : > { %s493_s12 = scalar_lea.sflag [#allocation6], %s492_s11 }
 0x1ff   : > { %p651_p11 = pnand %p656_p10, %p904_p8 }
 0x201   : > { %p652_p12 = pneg %p651_p11 }
 0x203   : > { %799 = dma.done.wait (%p652_p12), %s493_s12, 16  }
 0x204   : > { %801 = vsyncadd (%p652_p12), %s493_s12, 4294967280  ;;  %s19_s22 = sadd.s32 1, %s824_s22   ;;  %s976_s17 = smov %s808_s18 }
 0x205   : > { %p16_p13 = scmp.ge.s32.totalorder %s19_s22, 4   ;;  %s977_s18 = smov %s812_s19 }
 0x206   : > { %s978_s19 = smov %s910_s29  ;;  %s979_s20 = smov %s820_s21 }
 0x207   : > { %s980_s21 = smov %s982_s24  ;;  %18 = sbr.rel (!%p16_p13) target bundleno = 7 (0x7), region = 85 }
 0x20c   :  { %498 = vsyncpa [#allocation5], 1 }
 0x20d   :  { %500 = vsyncpa [#allocation5 + $0x1], 1 }
 0x20e   :  { %501 = vsyncpa [#allocation6], 1 }
 0x20f   :  { %503 = vsyncpa [#allocation6 + $0x1], 1 }

</bundles_post_ra>
